<compile_context>
chip_gen: v6e
topology: v6e:2x2x1
jax: 0.10.0
libtpu: 0.0.40
codegen_flags: <defaults>
</compile_context>

<pallas_src>
import functools

import jax
import jax.numpy as jnp
from jax.experimental import pallas as pl
from jax.experimental.pallas import tpu as pltpu


def cascaded_kernel(x_ref, w_ref, b_ref, o_ref, *, tanh_dtype):
    """Fused DPD->PA forward on one batch tile.

    x_ref : (block_b, P) compute_dtype
    w_ref : (3, P, P)    compute_dtype  -- [w1, w2 @ w3, w4]
    b_ref : (3, 1, P)    float32        -- [b1, b2 @ w3 + b3, b4]
    o_ref : (block_b, P) compute_dtype
    """
    x = x_ref[...]

    # dpd hidden: tanh(x @ w1 + b1)   (f32 MXU accumulation, bias add in f32)
    h = jnp.dot(x, w_ref[0], preferred_element_type=jnp.float32) + b_ref[0]
    h = jnp.tanh(h.astype(tanh_dtype))

    # fused dpd-out -> pa-hidden: tanh(h @ (w2 @ w3) + (b2 @ w3 + b3))
    g = jnp.dot(h.astype(w_ref.dtype), w_ref[1],
                preferred_element_type=jnp.float32) + b_ref[1]
    g = jnp.tanh(g.astype(tanh_dtype))

    # pa output: g @ w4 + b4
    out = jnp.dot(g.astype(w_ref.dtype), w_ref[2],
                  preferred_element_type=jnp.float32) + b_ref[2]
    o_ref[...] = out.astype(o_ref.dtype)


def _round_up(n, m):
    return ((n + m - 1) // m) * m


def _pad_to(a, shape):
    pads = [(0, t - s) for s, t in zip(a.shape, shape)]
    return jnp.pad(a, pads)


def _tanh_dtype(compute_dtype):
    """bf16 tanh on v6e/v7x (bf16 EUP); f32 on v5 and older (no bf16 EUP/VPU)."""
    if compute_dtype == jnp.float32:
        return jnp.float32
    try:
        kind = jax.devices()[0].device_kind.lower()
    except Exception:
        return jnp.float32
    if any(s in kind for s in ("v2", "v3", "v4", "v5")):
        return jnp.float32
    return compute_dtype


def _default_block_b(B):
    """Batch tile: multiple of 16 (bf16 sublanes); multiples of 256 and >= 2
    grid steps when the batch is large enough (MXU occupancy + v7x megacore),
    capped at 2048 rows (per-step overhead fully amortized, trivial VMEM)."""
    Bp = _round_up(B, 16)
    if Bp <= 256:
        return Bp                       # tiny-batch latency path: single tile
    blk = _round_up(pl.cdiv(Bp, 2), 256)  # at least 2 grid steps
    return min(2048, blk)


def prepare_params(params, *, compute_dtype=jnp.bfloat16):
    """One-time weight prep (do NOT re-run per inference call).

    - Algebraic fusion of the two back-to-back Linears (exact for inference):
          w23 = w2 @ w3,   b23 = b2 @ w3 + b3
    - Zero-pad everything to a common lane-dense width P (multiple of 128);
      padding with zeros is exact (tanh(0) = 0 and zero rows/cols contribute
      nothing).
    - Stack the 3 weights / 3 biases into single tensors so the kernel has
      only 3 inputs (fewer DMA buffers / index maps).
    """
    F, H = params["w1"].shape
    P = max(_round_up(F, 128), _round_up(H, 128))

    w2 = params["w2"].astype(jnp.float32)
    w3 = params["w3"].astype(jnp.float32)
    w23 = w2 @ w3
    b23 = params["b2"].astype(jnp.float32) @ w3 + params["b3"].astype(jnp.float32)

    w_stack = jnp.stack([
        _pad_to(params["w1"].astype(jnp.float32), (P, P)),
        _pad_to(w23, (P, P)),
        _pad_to(params["w4"].astype(jnp.float32), (P, P)),
    ]).astype(compute_dtype)                                   # (3, P, P)

    b_stack = jnp.stack([
        _pad_to(params["b1"].astype(jnp.float32).reshape(1, -1), (1, P)),
        _pad_to(b23.reshape(1, -1), (1, P)),
        _pad_to(params["b4"].astype(jnp.float32).reshape(1, -1), (1, P)),
    ])                                                         # (3, 1, P) f32

    return {"w": w_stack, "b": b_stack, "F": F, "P": P,
            "compute_dtype": compute_dtype}


def cascaded_forward(x, prepared, *, block_b=None):
    """x: [B, F] float.  prepared: output of prepare_params()."""
    B, F = x.shape
    assert F == prepared["F"], "feature dim mismatch with prepared params"
    P = prepared["P"]
    compute_dtype = prepared["compute_dtype"]
    w, b = prepared["w"], prepared["b"]

    if block_b is None:
        block_b = _default_block_b(B)
    block_b = max(16, _round_up(block_b, 16))   # bf16 sublane tile is (16, 128)
    grid_b = pl.cdiv(B, block_b)
    Bp = grid_b * block_b

    # Cast to compute dtype first, then pad batch tail + feature lanes (exact).
    xp = _pad_to(x.astype(compute_dtype), (Bp, P))

    # Advisory cost estimate for XLA's scheduler.
    flops = 2 * Bp * 3 * P * P
    transcendentals = 2 * Bp * P
    bytes_accessed = int(
        xp.size * xp.dtype.itemsize
        + w.size * w.dtype.itemsize + b.size * b.dtype.itemsize
        + Bp * P * jnp.dtype(compute_dtype).itemsize)

    kernel = functools.partial(cascaded_kernel,
                               tanh_dtype=_tanh_dtype(compute_dtype))

    out_padded = pl.pallas_call(
        kernel,
        out_shape=jax.ShapeDtypeStruct((Bp, P), compute_dtype),
        grid=(grid_b,),
        in_specs=[
            pl.BlockSpec((block_b, P), lambda i: (i, 0)),     # x tile (streamed)
            pl.BlockSpec((3, P, P), lambda i: (0, 0, 0)),     # weights (resident)
            pl.BlockSpec((3, 1, P), lambda i: (0, 0, 0)),     # biases  (resident)
        ],
        out_specs=pl.BlockSpec((block_b, P), lambda i: (i, 0)),
        compiler_params=pltpu.CompilerParams(
            dimension_semantics=("parallel",),
            vmem_limit_bytes=48 * 1024 * 1024),
        cost_estimate=pl.CostEstimate(
            flops=flops,
            transcendentals=transcendentals,
            bytes_accessed=bytes_accessed),
    )(xp, w, b)

    return out_padded[:B, :F].astype(x.dtype)


def reference_forward(x, p):
    """Unfused f32 reference (matches the PyTorch cascaded forward)."""
    h = jnp.tanh(x @ p["w1"] + p["b1"])
    y = h @ p["w2"] + p["b2"]
    g = jnp.tanh(y @ p["w3"] + p["b3"])
    return g @ p["w4"] + p["b4"]


def init_params(key, feat, hidden):
    ks = jax.random.split(key, 8)
    scale1 = 1.0 / jnp.sqrt(feat)
    scale2 = 1.0 / jnp.sqrt(hidden)
    return {
        # dpd_model
        "w1": jax.random.normal(ks[0], (feat, hidden), jnp.float32) * scale1,
        "b1": jax.random.normal(ks[1], (1, hidden), jnp.float32) * 0.01,
        "w2": jax.random.normal(ks[2], (hidden, feat), jnp.float32) * scale2,
        "b2": jax.random.normal(ks[3], (1, feat), jnp.float32) * 0.01,
        # pa_model
        "w3": jax.random.normal(ks[4], (feat, hidden), jnp.float32) * scale1,
        "b3": jax.random.normal(ks[5], (1, hidden), jnp.float32) * 0.01,
        "w4": jax.random.normal(ks[6], (hidden, feat), jnp.float32) * scale2,
        "b4": jax.random.normal(ks[7], (1, feat), jnp.float32) * 0.01,
    }


if __name__ == "__main__":
    # TODO(synk): freeze_pa_model() is a training-time flag (requires_grad);
    # it has no forward-pass effect, so nothing to translate here.
    key = jax.random.PRNGKey(0)
    kx, kp = jax.random.split(key)

    B, F, H = 8, 32, 64   # batch, features (IQ memory taps), hidden width
    x = jax.random.normal(kx, (B, F), jnp.float32)
    params = init_params(kp, F, H)

    prepared = prepare_params(params)   # one-time: fuse, pad, cast, stack

    # 1) Single-tile small case (default bf16 compute, f32 accumulation).
    out = jax.block_until_ready(cascaded_forward(x, prepared))
    ref = reference_forward(x, params)
    assert out.shape == (B, F)
    assert jnp.allclose(out, ref, atol=5e-2, rtol=5e-2), "mismatch (small)"

    # 2) Multi-tile case with a ragged batch tail (grid > 1 + batch padding).
    B2 = 24
    x2 = jax.random.normal(jax.random.PRNGKey(1), (B2, F), jnp.float32)
    out2 = jax.block_until_ready(cascaded_forward(x2, prepared, block_b=16))
    ref2 = reference_forward(x2, params)
    assert out2.shape == (B2, F)
    assert jnp.allclose(out2, ref2, atol=5e-2, rtol=5e-2), "mismatch (tiled)"

    # 3) Larger batch exercising the default big-tile / >=2-grid-step path.
    B3 = 300
    x3 = jax.random.normal(jax.random.PRNGKey(2), (B3, F), jnp.float32)
    out3 = jax.block_until_ready(cascaded_forward(x3, prepared))
    ref3 = reference_forward(x3, params)
    assert out3.shape == (B3, F)
    assert jnp.allclose(out3, ref3, atol=5e-2, rtol=5e-2), "mismatch (large)"

    print("KERNEL_OK")
</pallas_src>

<mosaic_0001>
module attributes {stable_mosaic.version = 11 : i64} {
  func.func @cascaded_kernel(%arg0: i32, %arg1: memref<16x128xbf16, #tpu.memory_space<vmem>>, %arg2: memref<3x128x128xbf16, #tpu.memory_space<vmem>>, %arg3: memref<3x1x128xf32, #tpu.memory_space<vmem>>, %arg4: memref<16x128xbf16, #tpu.memory_space<vmem>>) attributes {dimension_semantics = [#tpu.dimension_semantics<parallel>], iteration_bounds = array<i64: 1>, scalar_prefetch = 0 : i64, scratch_operands = 0 : i64, tpu.core_type = #tpu.core_type<tc>, window_params = [{transform_indices = @transform_0, window_bounds = array<i64: 16, 128>}, {pipeline_mode = #tpu.pipeline_mode<synchronous>, transform_indices = @transform_1, window_bounds = array<i64: 3, 128, 128>}, {pipeline_mode = #tpu.pipeline_mode<synchronous>, transform_indices = @transform_2, window_bounds = array<i64: 3, 1, 128>}, {transform_indices = @transform_3, window_bounds = array<i64: 16, 128>}]} {
    %c0 = arith.constant 0 : index
    %c0_0 = arith.constant 0 : index
    %0 = vector.load %arg1[%c0, %c0_0] : memref<16x128xbf16, #tpu.memory_space<vmem>>, vector<16x128xbf16>
    %c0_1 = arith.constant 0 : index
    %c0_2 = arith.constant 0 : index
    %c0_3 = arith.constant 0 : index
    %1 = vector.load %arg2[%c0_1, %c0_2, %c0_3] : memref<3x128x128xbf16, #tpu.memory_space<vmem>>, vector<1x128x128xbf16>
    %2 = vector.shape_cast %1 : vector<1x128x128xbf16> to vector<128x128xbf16>
    %cst = arith.constant dense<0.000000e+00> : vector<16x128xf32>
    %3 = tpu.matmul %0, %2, %cst {dimension_numbers = #tpu.dot_dimension_numbers<[1], [0], [0], [1], [0, 0, 1, 1], [], []>} : vector<16x128xbf16>, vector<128x128xbf16>, vector<16x128xf32> -> vector<16x128xf32>
    %c0_4 = arith.constant 0 : index
    %c0_5 = arith.constant 0 : index
    %c0_6 = arith.constant 0 : index
    %4 = vector.load %arg3[%c0_4, %c0_5, %c0_6] : memref<3x1x128xf32, #tpu.memory_space<vmem>>, vector<1x1x128xf32>
    %5 = vector.shape_cast %4 : vector<1x1x128xf32> to vector<1x128xf32>
    %6 = vector.broadcast %5 : vector<1x128xf32> to vector<16x128xf32>
    %7 = arith.addf %3, %6 : vector<16x128xf32>
    %8 = arith.truncf %7 : vector<16x128xf32> to vector<16x128xbf16>
    %9 = math.tanh %8 : vector<16x128xbf16>
    %c1 = arith.constant 1 : index
    %c0_7 = arith.constant 0 : index
    %c0_8 = arith.constant 0 : index
    %10 = vector.load %arg2[%c1, %c0_7, %c0_8] : memref<3x128x128xbf16, #tpu.memory_space<vmem>>, vector<1x128x128xbf16>
    %11 = vector.shape_cast %10 : vector<1x128x128xbf16> to vector<128x128xbf16>
    %cst_9 = arith.constant dense<0.000000e+00> : vector<16x128xf32>
    %12 = tpu.matmul %9, %11, %cst_9 {dimension_numbers = #tpu.dot_dimension_numbers<[1], [0], [0], [1], [0, 0, 1, 1], [], []>} : vector<16x128xbf16>, vector<128x128xbf16>, vector<16x128xf32> -> vector<16x128xf32>
    %c1_10 = arith.constant 1 : index
    %c0_11 = arith.constant 0 : index
    %c0_12 = arith.constant 0 : index
    %13 = vector.load %arg3[%c1_10, %c0_11, %c0_12] : memref<3x1x128xf32, #tpu.memory_space<vmem>>, vector<1x1x128xf32>
    %14 = vector.shape_cast %13 : vector<1x1x128xf32> to vector<1x128xf32>
    %15 = vector.broadcast %14 : vector<1x128xf32> to vector<16x128xf32>
    %16 = arith.addf %12, %15 : vector<16x128xf32>
    %17 = arith.truncf %16 : vector<16x128xf32> to vector<16x128xbf16>
    %18 = math.tanh %17 : vector<16x128xbf16>
    %c2 = arith.constant 2 : index
    %c0_13 = arith.constant 0 : index
    %c0_14 = arith.constant 0 : index
    %19 = vector.load %arg2[%c2, %c0_13, %c0_14] : memref<3x128x128xbf16, #tpu.memory_space<vmem>>, vector<1x128x128xbf16>
    %20 = vector.shape_cast %19 : vector<1x128x128xbf16> to vector<128x128xbf16>
    %cst_15 = arith.constant dense<0.000000e+00> : vector<16x128xf32>
    %21 = tpu.matmul %18, %20, %cst_15 {dimension_numbers = #tpu.dot_dimension_numbers<[1], [0], [0], [1], [0, 0, 1, 1], [], []>} : vector<16x128xbf16>, vector<128x128xbf16>, vector<16x128xf32> -> vector<16x128xf32>
    %c2_16 = arith.constant 2 : index
    %c0_17 = arith.constant 0 : index
    %c0_18 = arith.constant 0 : index
    %22 = vector.load %arg3[%c2_16, %c0_17, %c0_18] : memref<3x1x128xf32, #tpu.memory_space<vmem>>, vector<1x1x128xf32>
    %23 = vector.shape_cast %22 : vector<1x1x128xf32> to vector<1x128xf32>
    %24 = vector.broadcast %23 : vector<1x128xf32> to vector<16x128xf32>
    %25 = arith.addf %21, %24 : vector<16x128xf32>
    %26 = arith.truncf %25 : vector<16x128xf32> to vector<16x128xbf16>
    %c0_19 = arith.constant 0 : index
    %c0_20 = arith.constant 0 : index
    %27 = vector.load %arg4[%c0_19, %c0_20] : memref<16x128xbf16, #tpu.memory_space<vmem>>, vector<16x128xbf16>
    tpu.vector_store %arg4[%c0_19, %c0_20], %26 {strides = array<i32>} : memref<16x128xbf16, #tpu.memory_space<vmem>>, vector<16x128xbf16>,
    return
  }
  func.func @transform_0(%arg0: i32) -> (i32, i32) {
    %c0_i32 = arith.constant 0 : i32
    %c0_i32_0 = arith.constant 0 : i32
    return %arg0, %c0_i32 : i32, i32
  }
  func.func @transform_1(%arg0: i32) -> (i32, i32, i32) {
    %c0_i32 = arith.constant 0 : i32
    %c0_i32_0 = arith.constant 0 : i32
    %c0_i32_1 = arith.constant 0 : i32
    %c0_i32_2 = arith.constant 0 : i32
    return %c0_i32, %c0_i32_0, %c0_i32_1 : i32, i32, i32
  }
  func.func @transform_2(%arg0: i32) -> (i32, i32, i32) {
    %c0_i32 = arith.constant 0 : i32
    %c0_i32_0 = arith.constant 0 : i32
    %c0_i32_1 = arith.constant 0 : i32
    %c0_i32_2 = arith.constant 0 : i32
    return %c0_i32, %c0_i32_0, %c0_i32_1 : i32, i32, i32
  }
  func.func @transform_3(%arg0: i32) -> (i32, i32) {
    %c0_i32 = arith.constant 0 : i32
    %c0_i32_0 = arith.constant 0 : i32
    return %arg0, %c0_i32 : i32, i32
  }
}

</mosaic_0001>

<bundles_post_ra>
// kernel: tpu_custom_call.1
= control target key start
LH: loop header
LB: loop body
LE: loop exit
PB: predicated region body
PF: predicated region fallthrough
CT: control target
= control target key end

     0   :  { %8 = vsyncpa [#allocation3], 0  ;;  %s736_s0 = inlined_call_operand.hbm [shape: bf16[16,128], index: 0, kind: input, shape index: {}]   ;;  %s737_s1 = inlined_call_operand.hbm [shape: bf16[3,128,128], index: 1, kind: input, shape index: {}]   ;;  %s738_s2 = inlined_call_operand.vmem [shape: f32[3,1,128], index: 2, kind: input, shape index: {}]   ;;  %s739_s3 = inlined_call_operand.hbm [shape: bf16[16,128], index: 3, kind: output, shape index: {}]  }
   0x1   :  { %9 = vsyncpa [#allocation6], 0 }
   0x2   :  { %10 = vsyncpa [#allocation4], 0  ;;  %s652_s12 = smov [#allocation2]  }
   0x3   :  { %s16_s13 = sshll.u32 %s652_s12, 4  ;;  %s17_s13 = int_to_ptr.vmem [resolvable:$true] %s16_s13 }
   0x4   :  { %s594_s14 = scalar_lea.vmem %s17_s13, 128  ;;  %p599_p1 = scmp.lt.s32.totalorder %s17_s13, %s17_s13 }
   0x5   :  { %p595_p0 = scmp.ne.s32.totalorder %s17_s13, %s594_s14  ;;  %p600_p2 = scmp.lt.s32.totalorder %s594_s14, %s594_s14 }
   0x7   :  { %p601_p3 = por %p600_p2, %p599_p1 }
   0x9   :  { %p602_p4 = pnand %p601_p3, %p595_p0 }
   0xb   :  { %605 = shalt.err (!%p602_p4)
}
   0xc   :  { %s653_s15 = smov 64   ;;  %s654_s16 = smov 4  }
   0xd   :  { %22 = dma.hbm_to_vmem [thread:$0]  %s736_s0, 128, %s17_s13, [#allocation3], %s653_s15, %s653_s15, %s654_s16  }
   0xe   :  { %s655_s19 = smov [#allocation5]  }
   0xf   :  { %s28_s20 = sshll.u32 %s655_s19, 4  ;;  %s29_s20 = int_to_ptr.vmem [resolvable:$true] %s28_s20 }
  0x10   :  { %s614_s21 = scalar_lea.vmem %s29_s20, 3072  ;;  %p619_p6 = scmp.lt.s32.totalorder %s29_s20, %s29_s20 }
  0x11   :  { %p615_p5 = scmp.ne.s32.totalorder %s29_s20, %s614_s21  ;;  %p620_p7 = scmp.lt.s32.totalorder %s614_s21, %s614_s21 }
  0x13   :  { %p621_p8 = por %p620_p7, %p619_p6 }
  0x15   :  { %p622_p9 = pnand %p621_p8, %p615_p5 }
  0x17   :  { %625 = shalt.err (!%p622_p9)
}
  0x18   :  { %34 = dma.hbm_to_vmem [thread:$0]  %s737_s1, 3072, %s29_s20, [#allocation6], %s653_s15, %s653_s15, %s654_s16  }
  0x19   :  { %646 = dma.done.wait [#allocation3], 128  }
  0x1a   :  { %647 = vsyncadd [#allocation3], 4294967168 }
  0x1b   :  { %648 = dma.done.wait [#allocation6], 3072  }
  0x1c   :  { %649 = vsyncadd [#allocation6], 4294964224  ;;  %v656_v0 = vmov 0.0   ;;  %vm657_vm0 = vmmov 0   ;;  %v557_v1 = vld [vmem:[#allocation5 + $0x38] sm:$0xff]   ;;  %v558_v2 = vld [vmem:[#allocation5 + $0x30] sm:$0xff]  }
  0x1d   :  { %490 = vmatprep.subr.bf16.mxu0 %v656_v0  ;;  %506 = vmatprep.mubr.msk.bf16.mxu0 %vm657_vm0, %v656_v0  ;;  %v559_v3 = vld [vmem:[#allocation5 + $0x28] sm:$0xff]   ;;  %v566_v4 = vld [vmem:[#allocation5 + $0x78] sm:$0xff]   ;;  %v560_v5 = vld [vmem:[#allocation5 + $0x20] sm:$0xff]   ;;  %s658_s28 = smov [#allocation7]  }
  0x1e   :  { %510 = vmatprep.subr.bf16.mxu1 %v656_v0  ;;  %526 = vmatprep.mubr.msk.bf16.mxu1 %vm657_vm0, %v656_v0  ;;  %v567_v6 = vld [vmem:[#allocation5 + $0x70] sm:$0xff]   ;;  %v561_v7 = vld [vmem:[#allocation5 + $0x18] sm:$0xff]   ;;  %v563_v9 = vld [vmem:[#allocation5 + $0x8] sm:$0xff]   ;;  %s411_s29 = sshll.u32 %s658_s28, 4  ;;  %s412_s29 = int_to_ptr.vmem [resolvable:$true] %s411_s29 }
  0x1f   :  { %491 = vmatpush3.bf16.msra.mxu0 %v557_v1  ;;  %511 = vmatpush3.bf16.msra.mxu1 %v566_v4  ;;  %v562_v8 = vld [vmem:[#allocation5 + $0x10] sm:$0xff]   ;;  %v564_v10 = vld [vmem:[#allocation5] sm:$0xff]   ;;  %v565_v11 = vld [vmem:[#allocation2] sm:$0xff]   ;;  %s626_s30 = scalar_lea.vmem %s412_s29, 128  ;;  %p631_p11 = scmp.lt.s32.totalorder %s412_s29, %s412_s29 }
  0x20   :  { %492 = vmatprep.subr.bf16.mxu0 %v656_v0  ;;  %512 = vmatprep.subr.bf16.mxu1 %v656_v0  ;;  %v568_v12 = vld [vmem:[#allocation5 + $0x68] sm:$0xff]   ;;  %v569_v13 = vld [vmem:[#allocation5 + $0x60] sm:$0xff]   ;;  %v570_v14 = vld [vmem:[#allocation5 + $0x58] sm:$0xff]   ;;  %p627_p10 = scmp.ne.s32.totalorder %s412_s29, %s626_s30  ;;  %p632_p12 = scmp.lt.s32.totalorder %s626_s30, %s626_s30 }
  0x21   :  { %v571_v15 = vld [vmem:[#allocation5 + $0x50] sm:$0xff]   ;;  %v572_v16 = vld [vmem:[#allocation5 + $0x48] sm:$0xff]   ;;  %v573_v17 = vld [vmem:[#allocation5 + $0x40] sm:$0xff]  }
  0x22   :  { %v574_v18 = vld [vmem:[#allocation5 + $0xb8] sm:$0xff]   ;;  %v575_v19 = vld [vmem:[#allocation5 + $0xb0] sm:$0xff]   ;;  %v576_v29 = vld [vmem:[#allocation5 + $0xa8] sm:$0xff]   ;;  %p633_p13 = por %p632_p12, %p631_p11 }
  0x23   :  { %493 = vmatpush3.bf16.msra.mxu0 %v558_v2  ;;  %513 = vmatpush3.bf16.msra.mxu1 %v567_v6  ;;  %v424_v21 = vld [vmem:[%s738_s2] ss:$0 sm:$0xff]  ;;  %v577_v30 = vld [vmem:[#allocation5 + $0xa0] sm:$0xff]   ;;  %v579_v32 = vld [vmem:[#allocation5 + $0x90] sm:$0xff]  }
  0x24   :  { %494 = vmatprep.subr.bf16.mxu0 %v656_v0  ;;  %514 = vmatprep.subr.bf16.mxu1 %v656_v0  ;;  %v578_v31 = vld [vmem:[#allocation5 + $0x98] sm:$0xff]   ;;  %v580_v33 = vld [vmem:[#allocation5 + $0x88] sm:$0xff]   ;;  %v581_v34 = vld [vmem:[#allocation5 + $0x80] sm:$0xff]   ;;  %p634_p0 = pnand %p633_p13, %p627_p10 }
  0x25   :  { %v435_v36 = vld [vmem:[%s738_s2 + $0x1] ss:$0 sm:$0xff]  ;;  %v445_v45 = vld [vmem:[%s738_s2 + $0x2] ss:$0 sm:$0xff] }
  0x27   :  { %495 = vmatpush3.bf16.msra.mxu0 %v559_v3  ;;  %515 = vmatpush3.bf16.msra.mxu1 %v568_v12 }
  0x28   :  { %496 = vmatprep.subr.bf16.mxu0 %v656_v0  ;;  %516 = vmatprep.subr.bf16.mxu1 %v656_v0 }
  0x2b   :  { %497 = vmatpush3.bf16.msra.mxu0 %v560_v5  ;;  %517 = vmatpush3.bf16.msra.mxu1 %v569_v13 }
  0x2c   :  { %498 = vmatprep.subr.bf16.mxu0 %v656_v0  ;;  %518 = vmatprep.subr.bf16.mxu1 %v656_v0 }
  0x2f   :  { %499 = vmatpush3.bf16.msra.mxu0 %v561_v7  ;;  %519 = vmatpush3.bf16.msra.mxu1 %v570_v14 }
  0x30   :  { %500 = vmatprep.subr.bf16.mxu0 %v656_v0  ;;  %520 = vmatprep.subr.bf16.mxu1 %v656_v0 }
  0x33   :  { %501 = vmatpush3.bf16.msra.mxu0 %v562_v8  ;;  %521 = vmatpush3.bf16.msra.mxu1 %v571_v15 }
  0x34   :  { %502 = vmatprep.subr.bf16.mxu0 %v656_v0  ;;  %522 = vmatprep.subr.bf16.mxu1 %v656_v0 }
  0x37   :  { %503 = vmatpush3.bf16.msra.mxu0 %v563_v9  ;;  %523 = vmatpush3.bf16.msra.mxu1 %v572_v16 }
  0x38   :  { %504 = vmatprep.subr.bf16.mxu0 %v656_v0  ;;  %524 = vmatprep.subr.bf16.mxu1 %v656_v0 }
  0x3b   :  { %505 = vmatpush3.bf16.msra.mxu0 %v564_v10  ;;  %525 = vmatpush3.bf16.msra.mxu1 %v573_v17 }
  0x3c   :  { %530 = vmatprep.subr.bf16.mxu0 %v656_v0 }
  0x3e   :  { %507 = vmatmul.mubr.bf16.vlgmr.msra.gmra.mxu0 %v565_v11 }
  0x3f   :  { %546 = vmatprep.mubr.msk.bf16.mxu0 %vm657_vm0, %v656_v0  ;;  %531 = vmatpush3.bf16.msra.mxu0 %v574_v18 }
  0x40   :  { %532 = vmatprep.subr.bf16.mxu0 %v656_v0 }
  0x43   :  { %533 = vmatpush3.bf16.msra.mxu0 %v575_v19 }
  0x44   :  { %534 = vmatprep.subr.bf16.mxu0 %v656_v0 }
  0x47   :  { %535 = vmatpush3.bf16.msra.mxu0 %v576_v29 }
  0x48   :  { %536 = vmatprep.subr.bf16.mxu0 %v656_v0 }
  0x4b   :  { %537 = vmatpush3.bf16.msra.mxu0 %v577_v30 }
  0x4c   :  { %538 = vmatprep.subr.bf16.mxu0 %v656_v0 }
  0x4f   :  { %539 = vmatpush3.bf16.msra.mxu0 %v578_v31 }
  0x50   :  { %540 = vmatprep.subr.bf16.mxu0 %v656_v0 }
  0x53   :  { %541 = vmatpush3.bf16.msra.mxu0 %v579_v32 }
  0x54   :  { %542 = vmatprep.subr.bf16.mxu0 %v656_v0 }
  0x57   :  { %543 = vmatpush3.bf16.msra.mxu0 %v580_v33 }
  0x58   :  { %544 = vmatprep.subr.bf16.mxu0 %v656_v0 }
  0x5b   :  { %545 = vmatpush3.bf16.msra.mxu0 %v581_v34 }
  0xfe   :  { %v157_v20 = vpop.f32.mrf.mxu0 }
  0xff   :  { %v158_v24 = vadd.f32 %v424_v21, %v157_v20 }
 0x100   :  { %v508_v22 = vpop.f32.mrf.mxu0 }
 0x102   :  { %v160_v23 = vpop.f32.mrf.mxu0 }
 0x103   :  { %v161_v25 = vadd.f32 %v424_v21, %v160_v23 }
 0x104   :  { %v509_v26 = vpop.f32.mrf.mxu0 }
 0x105   :  { %v164_v27 = vpack.c.bf16 %v161_v25, %v158_v24 }
 0x107   :  { %582 = vtanh.bf16 %v164_v27 }
 0x115   :  { %v583_v28 = vpop.eup %582 }
 0x116   :  { %527 = vmatmul.mubr.bf16.vlgmr.msra.gmra.mxu1 %v583_v28 }
 0x1d6   :  { %v273_v35 = vpop.f32.mrf.mxu1 }
 0x1d7   :  { %v274_v39 = vadd.f32 %v435_v36, %v273_v35 }
 0x1d8   :  { %v528_v37 = vpop.f32.mrf.mxu1 }
 0x1da   :  { %v276_v38 = vpop.f32.mrf.mxu1 }
 0x1db   :  { %v277_v40 = vadd.f32 %v435_v36, %v276_v38 }
 0x1dc   :  { %v529_v41 = vpop.f32.mrf.mxu1 }
 0x1dd   :  { %v280_v42 = vpack.c.bf16 %v277_v40, %v274_v39 }
 0x1df   :  { %584 = vtanh.bf16 %v280_v42 }
 0x1ed   :  { %v585_v43 = vpop.eup %584 }
 0x1ee   :  { %547 = vmatmul.mubr.bf16.vlgmr.msra.gmra.mxu0 %v585_v43 }
 0x2ae   :  { %v389_v44 = vpop.f32.mrf.mxu0 }
 0x2af   :  { %v390_v48 = vadd.f32 %v445_v45, %v389_v44 }
 0x2b0   :  { %v548_v46 = vpop.f32.mrf.mxu0 }
 0x2b2   :  { %v392_v47 = vpop.f32.mrf.mxu0 }
 0x2b3   :  { %v393_v49 = vadd.f32 %v445_v45, %v392_v47 }
 0x2b4   :  { %v549_v50 = vpop.f32.mrf.mxu0 }
 0x2b5   :  { %v461_v51 = vpack.c.bf16 %v393_v49, %v390_v48 }
 0x2b7   :  { %462 = vst [vmem:[#allocation7] sm:$0xff] %v461_v51  }
 0x2b8   :  { %637 = shalt.err (!%p634_p0)
}
 0x2b9   :  { %417 = dma.vmem_to_hbm [thread:$0]  %s412_s29, 128, %s739_s3, [#allocation4], %s653_s15, %s653_s15, %s654_s16  }
 0x2ba   :  { %650 = dma.done.wait [#allocation4], 128  }
 0x2bb   :  { %651 = vsyncadd [#allocation4], 4294967168 }
 0x2bc   :  { %421 = vsyncpa [#allocation3], 1 }
 0x2bd   :  { %422 = vsyncpa [#allocation6], 1 }
 0x2be   :  { %423 = vsyncpa [#allocation4], 1 }

</bundles_post_ra>
